<compile_context>
chip_gen: v6e
topology: v6e:2x2x1
jax: 0.10.0
libtpu: 0.0.40
codegen_flags: <defaults>
</compile_context>

<pallas_src>
import functools

import jax
import jax.numpy as jnp
from jax.experimental import pallas as pl
from jax.experimental.pallas import tpu as pltpu

LANE = 128       # vreg lane width (last dim)
GRANULE = 16     # batch-tile granule (covers bf16 sublane packing: 16 rows)


def _round_up(x, m):
    return (x + m - 1) // m * m


def _select_act_dtype():
    """bf16 tanh on v6e / v7x (EUP bf16); f32 path on v5e and older."""
    kind = jax.devices()[0].device_kind.lower()
    if "v6" in kind or "v7" in kind:
        return jnp.bfloat16
    return jnp.float32


def _choose_batch_tile(B):
    """Batch tile: big enough to amortize per-step overhead, >=2 grid steps
    for non-trivial batches (v7x megacore sharding), capped at 2048 rows."""
    b_r = _round_up(B, GRANULE)
    if b_r <= GRANULE:
        return b_r
    return min(2048, _round_up(pl.cdiv(B, 2), GRANULE))


def _fused_mlp_kernel(*refs, n_layers, in_dim, out_dim, act_dtype):
    """refs = (x_ref, w0, b0, ..., w_{L-1}, b_{L-1}, o_ref, xpad_ref).

    x_ref    : [B_TILE, IN_DIM]        bf16   (unpadded real features)
    w_l      : [D_IN_PAD, D_OUT_PAD]   bf16   (zero-padded to 128 multiples)
    b_l      : [1, D_OUT_PAD]          f32    (zero-padded)
    o_ref    : [B_TILE, OUT_DIM]       f32    (unpadded real outputs)
    xpad_ref : [B_TILE, IN_PAD]        bf16   VMEM staging buffer
    The running activation stays VMEM/vreg-resident across the layer loop.
    """
    x_ref = refs[0]
    o_ref = refs[-2]
    xpad_ref = refs[-1]
    wb = refs[1:-2]

    # Zero-fill the lane-padded staging buffer every step (scratch persists
    # across grid steps and is NOT shared between megacore shards, so do not
    # gate this on program_id == 0), then drop the real [b_tile, in_dim]
    # tile into its first lanes.  Padded lanes stay zero, padded weight rows
    # are zero, padded biases are zero and tanh(0) == 0, so padded lanes can
    # never pollute real outputs.  (If the activation is ever changed to one
    # with f(0) != 0, the padded lanes must be masked instead.)
    xpad_ref[...] = jnp.zeros_like(xpad_ref)
    xpad_ref[:, :in_dim] = x_ref[...]
    h = xpad_ref[...]                                   # bf16 [b_tile, in_pad]

    for l in range(n_layers):
        w_ref = wb[2 * l]
        b_ref = wb[2 * l + 1]
        # bf16 x bf16 -> f32 accumulation on the MXU; f32 bias add.
        acc = jnp.dot(h, w_ref[...], preferred_element_type=jnp.float32)
        acc = acc + b_ref[...]
        if l < n_layers - 1:
            # Hidden layers: tanh (bf16 on v6e/v7x, f32 on v5e), next-layer
            # operand is bf16 either way.
            h = jnp.tanh(acc.astype(act_dtype)).astype(jnp.bfloat16)
        else:
            # Final layer: emit only the real output columns (lane-masked
            # store of width out_dim).
            o_ref[...] = acc[:, :out_dim].astype(o_ref.dtype)


def _xavier_uniform(key, fan_out, fan_in):
    # Matches nn.init.xavier_uniform_ on a [out, in] weight.
    limit = jnp.sqrt(6.0 / (fan_in + fan_out))
    return jax.random.uniform(key, (fan_out, fan_in), jnp.float32, -limit, limit)


def init_fcn_params(key, in_dim, out_dim, n_hidden_layers, n_neurons):
    """Xavier-uniform weights / zero biases (mirrors FCN._initialize_weights).

    Weights are transposed to [in, out], zero-padded to multiples of 128 on
    both axes, and stored in bf16; biases are [1, out_pad] f32.
    """
    dims = [(in_dim, n_neurons)]
    dims += [(n_neurons, n_neurons)] * (n_hidden_layers - 1)
    dims += [(n_neurons, out_dim)]
    keys = jax.random.split(key, len(dims))
    layers = []
    for k, (d_in, d_out) in zip(keys, dims):
        w_torch = _xavier_uniform(k, d_out, d_in)          # [out, in] like PyTorch
        w = w_torch.T                                      # [in, out] for the kernel
        d_in_pad = _round_up(d_in, LANE)
        d_out_pad = _round_up(d_out, LANE)
        w_pad = jnp.zeros((d_in_pad, d_out_pad), jnp.float32)
        w_pad = w_pad.at[:d_in, :d_out].set(w)
        b_pad = jnp.zeros((1, d_out_pad), jnp.float32)
        layers.append((w_pad.astype(jnp.bfloat16), b_pad))
    return {"layers": layers, "in_dim": in_dim, "out_dim": out_dim}


def fcn_forward(model, x):
    """Forward: (Linear+Tanh) x N_HIDDEN_LAYERS, then final Linear. One pallas_call."""
    layers = model["layers"]
    in_dim = model["in_dim"]
    out_dim = model["out_dim"]
    n_layers = len(layers)

    B = x.shape[0]
    in_pad = layers[0][0].shape[0]
    act_dtype = _select_act_dtype()

    b_tile = _choose_batch_tile(B)
    b_pad = _round_up(B, b_tile)

    # Only the batch axis is (cheaply) padded; feature axes stay unpadded in HBM.
    x_bf = x.astype(jnp.bfloat16)
    if b_pad != B:
        x_bf = jnp.pad(x_bf, ((0, b_pad - B), (0, 0)))

    # Resident-weight footprint.  Constant-index blocks are fetched once and
    # stay VMEM-resident across grid steps; for big configs single-buffer
    # them so the budget also fits v7x's 64 MiB VMEM.
    weight_bytes = sum(int(w.size) * w.dtype.itemsize + int(b.size) * b.dtype.itemsize
                       for w, b in layers)
    single_buffer_weights = weight_bytes > (4 << 20)
    # TODO(synk): for n_neurons >= ~2048 add a hidden-dim grid axis instead of
    # keeping every layer resident (v7x has only 64 MiB VMEM per TensorCore).

    kernel = functools.partial(_fused_mlp_kernel, n_layers=n_layers,
                               in_dim=in_dim, out_dim=out_dim,
                               act_dtype=act_dtype)

    in_specs = [pl.BlockSpec((b_tile, in_dim), lambda i: (i, 0))]
    inputs = [x_bf]
    flops = 0
    transcendentals = 0
    bytes_accessed = int(x_bf.size) * 2 + int(b_pad * out_dim) * 4 + weight_bytes
    for idx, (w, b) in enumerate(layers):
        d_in_p, d_out_p = w.shape
        if single_buffer_weights:
            w_spec = pl.BlockSpec((d_in_p, d_out_p), lambda i: (0, 0),
                                  pipeline_mode=pl.Buffered(1))
            b_spec = pl.BlockSpec((1, d_out_p), lambda i: (0, 0),
                                  pipeline_mode=pl.Buffered(1))
        else:
            w_spec = pl.BlockSpec((d_in_p, d_out_p), lambda i: (0, 0))
            b_spec = pl.BlockSpec((1, d_out_p), lambda i: (0, 0))
        in_specs.append(w_spec)
        in_specs.append(b_spec)
        inputs.append(w)
        inputs.append(b)
        flops += 2 * int(b_pad) * d_in_p * d_out_p
        if idx < n_layers - 1:
            transcendentals += int(b_pad) * d_out_p

    # VMEM budget: double-buffered x/out tiles + resident weights + staging
    # buffer + headroom.  Only raise the scoped limit if we actually need to,
    # and never above 64 MiB (v7x physical VMEM).
    weight_buf_factor = 1 if single_buffer_weights else 2
    vmem_est = (2 * b_tile * in_dim * 2 + 2 * b_tile * out_dim * 4
                + weight_buf_factor * weight_bytes + b_tile * in_pad * 2
                + (2 << 20))
    vmem_limit = None
    if vmem_est > (32 << 20):
        vmem_limit = min(64 << 20, _round_up(vmem_est, 1 << 20))

    out_padded = pl.pallas_call(
        kernel,
        out_shape=jax.ShapeDtypeStruct((b_pad, out_dim), jnp.float32),
        grid=(b_pad // b_tile,),
        in_specs=in_specs,
        out_specs=pl.BlockSpec((b_tile, out_dim), lambda i: (i, 0)),
        scratch_shapes=[pltpu.VMEM((b_tile, in_pad), jnp.bfloat16)],
        compiler_params=pltpu.CompilerParams(
            dimension_semantics=("parallel",),
            vmem_limit_bytes=vmem_limit),
        cost_estimate=pl.CostEstimate(
            flops=flops,
            transcendentals=transcendentals,
            bytes_accessed=bytes_accessed),
    )(*inputs)

    if b_pad != B:
        out_padded = out_padded[:B]
    return out_padded


if __name__ == "__main__":
    # Small, shape-consistent config: IN_DIM=4, OUT_DIM=2, N_HIDDEN_LAYERS=3,
    # N_NEURONS=32.  BATCH=64 keeps shapes small while still exercising a
    # multi-step (megacore-shardable) grid.  Real benchmarking should use the
    # production batch size (at tiny B the call is dispatch/DMA-latency bound).
    IN_DIM, OUT_DIM, N_HIDDEN_LAYERS, N_NEURONS = 4, 2, 3, 32
    BATCH = 64

    key = jax.random.PRNGKey(0)
    kp, kx = jax.random.split(key)
    model = init_fcn_params(kp, IN_DIM, OUT_DIM, N_HIDDEN_LAYERS, N_NEURONS)
    x = jax.random.normal(kx, (BATCH, IN_DIM), jnp.float32)

    out = jax.block_until_ready(fcn_forward(model, x))

    # Pure-JAX reference mirroring the exact kernel math (zero lane-padding,
    # bf16 operands, f32 accumulation, f32 bias, act_dtype tanh).
    layers = model["layers"]
    act_dtype = _select_act_dtype()
    in_pad = layers[0][0].shape[0]
    h = jnp.zeros((BATCH, in_pad), jnp.bfloat16).at[:, :IN_DIM].set(
        x.astype(jnp.bfloat16))
    ref = None
    for idx, (w, b) in enumerate(layers):
        acc = jnp.dot(h, w, preferred_element_type=jnp.float32) + b
        if idx < len(layers) - 1:
            h = jnp.tanh(acc.astype(act_dtype)).astype(jnp.bfloat16)
        else:
            ref = acc[:, :OUT_DIM]

    assert out.shape == (BATCH, OUT_DIM), out.shape
    max_err = float(jnp.max(jnp.abs(out - ref)))
    assert jnp.allclose(out, ref, atol=1e-2, rtol=1e-2), max_err

    print("KERNEL_OK")
</pallas_src>

<mosaic_0001>
module attributes {stable_mosaic.version = 11 : i64} {
  func.func @_fused_mlp_kernel(%arg0: i32, %arg1: memref<32x4xbf16, #tpu.memory_space<vmem>>, %arg2: memref<128x128xbf16, #tpu.memory_space<vmem>>, %arg3: memref<1x128xf32, #tpu.memory_space<vmem>>, %arg4: memref<128x128xbf16, #tpu.memory_space<vmem>>, %arg5: memref<1x128xf32, #tpu.memory_space<vmem>>, %arg6: memref<128x128xbf16, #tpu.memory_space<vmem>>, %arg7: memref<1x128xf32, #tpu.memory_space<vmem>>, %arg8: memref<128x128xbf16, #tpu.memory_space<vmem>>, %arg9: memref<1x128xf32, #tpu.memory_space<vmem>>, %arg10: memref<32x2xf32, #tpu.memory_space<vmem>>, %arg11: memref<32x128xbf16, #tpu.memory_space<vmem>>) attributes {dimension_semantics = [#tpu.dimension_semantics<parallel>], iteration_bounds = array<i64: 2>, scalar_prefetch = 0 : i64, scratch_operands = 1 : i64, tpu.core_type = #tpu.core_type<tc>, window_params = [{transform_indices = @transform_0, window_bounds = array<i64: 32, 4>}, {pipeline_mode = #tpu.pipeline_mode<synchronous>, transform_indices = @transform_1, window_bounds = array<i64: 128, 128>}, {pipeline_mode = #tpu.pipeline_mode<synchronous>, transform_indices = @transform_2, window_bounds = array<i64: 1, 128>}, {pipeline_mode = #tpu.pipeline_mode<synchronous>, transform_indices = @transform_3, window_bounds = array<i64: 128, 128>}, {pipeline_mode = #tpu.pipeline_mode<synchronous>, transform_indices = @transform_4, window_bounds = array<i64: 1, 128>}, {pipeline_mode = #tpu.pipeline_mode<synchronous>, transform_indices = @transform_5, window_bounds = array<i64: 128, 128>}, {pipeline_mode = #tpu.pipeline_mode<synchronous>, transform_indices = @transform_6, window_bounds = array<i64: 1, 128>}, {pipeline_mode = #tpu.pipeline_mode<synchronous>, transform_indices = @transform_7, window_bounds = array<i64: 128, 128>}, {pipeline_mode = #tpu.pipeline_mode<synchronous>, transform_indices = @transform_8, window_bounds = array<i64: 1, 128>}, {transform_indices = @transform_9, window_bounds = array<i64: 32, 2>}]} {
    %cst = arith.constant 0.000000e+00 : bf16
    %0 = vector.broadcast %cst : bf16 to vector<32x128xbf16>
    %c0 = arith.constant 0 : index
    %c0_0 = arith.constant 0 : index
    %1 = vector.load %arg11[%c0, %c0_0] : memref<32x128xbf16, #tpu.memory_space<vmem>>, vector<32x128xbf16>
    tpu.vector_store %arg11[%c0, %c0_0], %0 {strides = array<i32>} : memref<32x128xbf16, #tpu.memory_space<vmem>>, vector<32x128xbf16>,
    %c0_1 = arith.constant 0 : index
    %c0_2 = arith.constant 0 : index
    %2 = vector.load %arg1[%c0_1, %c0_2] : memref<32x4xbf16, #tpu.memory_space<vmem>>, vector<32x4xbf16>
    %c0_3 = arith.constant 0 : index
    %c0_4 = arith.constant 0 : index
    %3 = vector.load %arg11[%c0_3, %c0_4] : memref<32x128xbf16, #tpu.memory_space<vmem>>, vector<32x4xbf16>
    tpu.vector_store %arg11[%c0_3, %c0_4], %2 {strides = array<i32>} : memref<32x128xbf16, #tpu.memory_space<vmem>>, vector<32x4xbf16>,
    %c0_5 = arith.constant 0 : index
    %c0_6 = arith.constant 0 : index
    %4 = vector.load %arg11[%c0_5, %c0_6] : memref<32x128xbf16, #tpu.memory_space<vmem>>, vector<32x128xbf16>
    %c0_7 = arith.constant 0 : index
    %c0_8 = arith.constant 0 : index
    %5 = vector.load %arg2[%c0_7, %c0_8] : memref<128x128xbf16, #tpu.memory_space<vmem>>, vector<128x128xbf16>
    %cst_9 = arith.constant dense<0.000000e+00> : vector<32x128xf32>
    %6 = tpu.matmul %4, %5, %cst_9 {dimension_numbers = #tpu.dot_dimension_numbers<[1], [0], [0], [1], [0, 0, 1, 1], [], []>} : vector<32x128xbf16>, vector<128x128xbf16>, vector<32x128xf32> -> vector<32x128xf32>
    %c0_10 = arith.constant 0 : index
    %c0_11 = arith.constant 0 : index
    %7 = vector.load %arg3[%c0_10, %c0_11] : memref<1x128xf32, #tpu.memory_space<vmem>>, vector<1x128xf32>
    %8 = vector.broadcast %7 : vector<1x128xf32> to vector<32x128xf32>
    %9 = arith.addf %6, %8 : vector<32x128xf32>
    %10 = math.tanh %9 : vector<32x128xf32>
    %11 = arith.truncf %10 : vector<32x128xf32> to vector<32x128xbf16>
    %c0_12 = arith.constant 0 : index
    %c0_13 = arith.constant 0 : index
    %12 = vector.load %arg4[%c0_12, %c0_13] : memref<128x128xbf16, #tpu.memory_space<vmem>>, vector<128x128xbf16>
    %cst_14 = arith.constant dense<0.000000e+00> : vector<32x128xf32>
    %13 = tpu.matmul %11, %12, %cst_14 {dimension_numbers = #tpu.dot_dimension_numbers<[1], [0], [0], [1], [0, 0, 1, 1], [], []>} : vector<32x128xbf16>, vector<128x128xbf16>, vector<32x128xf32> -> vector<32x128xf32>
    %c0_15 = arith.constant 0 : index
    %c0_16 = arith.constant 0 : index
    %14 = vector.load %arg5[%c0_15, %c0_16] : memref<1x128xf32, #tpu.memory_space<vmem>>, vector<1x128xf32>
    %15 = vector.broadcast %14 : vector<1x128xf32> to vector<32x128xf32>
    %16 = arith.addf %13, %15 : vector<32x128xf32>
    %17 = math.tanh %16 : vector<32x128xf32>
    %18 = arith.truncf %17 : vector<32x128xf32> to vector<32x128xbf16>
    %c0_17 = arith.constant 0 : index
    %c0_18 = arith.constant 0 : index
    %19 = vector.load %arg6[%c0_17, %c0_18] : memref<128x128xbf16, #tpu.memory_space<vmem>>, vector<128x128xbf16>
    %cst_19 = arith.constant dense<0.000000e+00> : vector<32x128xf32>
    %20 = tpu.matmul %18, %19, %cst_19 {dimension_numbers = #tpu.dot_dimension_numbers<[1], [0], [0], [1], [0, 0, 1, 1], [], []>} : vector<32x128xbf16>, vector<128x128xbf16>, vector<32x128xf32> -> vector<32x128xf32>
    %c0_20 = arith.constant 0 : index
    %c0_21 = arith.constant 0 : index
    %21 = vector.load %arg7[%c0_20, %c0_21] : memref<1x128xf32, #tpu.memory_space<vmem>>, vector<1x128xf32>
    %22 = vector.broadcast %21 : vector<1x128xf32> to vector<32x128xf32>
    %23 = arith.addf %20, %22 : vector<32x128xf32>
    %24 = math.tanh %23 : vector<32x128xf32>
    %25 = arith.truncf %24 : vector<32x128xf32> to vector<32x128xbf16>
    %c0_22 = arith.constant 0 : index
    %c0_23 = arith.constant 0 : index
    %26 = vector.load %arg8[%c0_22, %c0_23] : memref<128x128xbf16, #tpu.memory_space<vmem>>, vector<128x128xbf16>
    %cst_24 = arith.constant dense<0.000000e+00> : vector<32x128xf32>
    %27 = tpu.matmul %25, %26, %cst_24 {dimension_numbers = #tpu.dot_dimension_numbers<[1], [0], [0], [1], [0, 0, 1, 1], [], []>} : vector<32x128xbf16>, vector<128x128xbf16>, vector<32x128xf32> -> vector<32x128xf32>
    %c0_25 = arith.constant 0 : index
    %c0_26 = arith.constant 0 : index
    %28 = vector.load %arg9[%c0_25, %c0_26] : memref<1x128xf32, #tpu.memory_space<vmem>>, vector<1x128xf32>
    %29 = vector.broadcast %28 : vector<1x128xf32> to vector<32x128xf32>
    %30 = arith.addf %27, %29 : vector<32x128xf32>
    %31 = vector.extract_strided_slice %30 {offsets = [0, 0], sizes = [32, 2], strides = [1, 1]} : vector<32x128xf32> to vector<32x2xf32>
    %c0_27 = arith.constant 0 : index
    %c0_28 = arith.constant 0 : index
    %32 = vector.load %arg10[%c0_27, %c0_28] : memref<32x2xf32, #tpu.memory_space<vmem>>, vector<32x2xf32>
    tpu.vector_store %arg10[%c0_27, %c0_28], %31 {strides = array<i32>} : memref<32x2xf32, #tpu.memory_space<vmem>>, vector<32x2xf32>,
    return
  }
  func.func @transform_0(%arg0: i32) -> (i32, i32) {
    %c0_i32 = arith.constant 0 : i32
    %c0_i32_0 = arith.constant 0 : i32
    return %arg0, %c0_i32 : i32, i32
  }
  func.func @transform_1(%arg0: i32) -> (i32, i32) {
    %c0_i32 = arith.constant 0 : i32
    %c0_i32_0 = arith.constant 0 : i32
    %c0_i32_1 = arith.constant 0 : i32
    return %c0_i32, %c0_i32_0 : i32, i32
  }
  func.func @transform_2(%arg0: i32) -> (i32, i32) {
    %c0_i32 = arith.constant 0 : i32
    %c0_i32_0 = arith.constant 0 : i32
    %c0_i32_1 = arith.constant 0 : i32
    return %c0_i32, %c0_i32_0 : i32, i32
  }
  func.func @transform_3(%arg0: i32) -> (i32, i32) {
    %c0_i32 = arith.constant 0 : i32
    %c0_i32_0 = arith.constant 0 : i32
    %c0_i32_1 = arith.constant 0 : i32
    return %c0_i32, %c0_i32_0 : i32, i32
  }
  func.func @transform_4(%arg0: i32) -> (i32, i32) {
    %c0_i32 = arith.constant 0 : i32
    %c0_i32_0 = arith.constant 0 : i32
    %c0_i32_1 = arith.constant 0 : i32
    return %c0_i32, %c0_i32_0 : i32, i32
  }
  func.func @transform_5(%arg0: i32) -> (i32, i32) {
    %c0_i32 = arith.constant 0 : i32
    %c0_i32_0 = arith.constant 0 : i32
    %c0_i32_1 = arith.constant 0 : i32
    return %c0_i32, %c0_i32_0 : i32, i32
  }
  func.func @transform_6(%arg0: i32) -> (i32, i32) {
    %c0_i32 = arith.constant 0 : i32
    %c0_i32_0 = arith.constant 0 : i32
    %c0_i32_1 = arith.constant 0 : i32
    return %c0_i32, %c0_i32_0 : i32, i32
  }
  func.func @transform_7(%arg0: i32) -> (i32, i32) {
    %c0_i32 = arith.constant 0 : i32
    %c0_i32_0 = arith.constant 0 : i32
    %c0_i32_1 = arith.constant 0 : i32
    return %c0_i32, %c0_i32_0 : i32, i32
  }
  func.func @transform_8(%arg0: i32) -> (i32, i32) {
    %c0_i32 = arith.constant 0 : i32
    %c0_i32_0 = arith.constant 0 : i32
    %c0_i32_1 = arith.constant 0 : i32
    return %c0_i32, %c0_i32_0 : i32, i32
  }
  func.func @transform_9(%arg0: i32) -> (i32, i32) {
    %c0_i32 = arith.constant 0 : i32
    %c0_i32_0 = arith.constant 0 : i32
    return %arg0, %c0_i32 : i32, i32
  }
}

</mosaic_0001>

<bundles_post_ra>
// kernel: tpu_custom_call.1
= control target key start
LH: loop header
LB: loop body
LE: loop exit
PB: predicated region body
PF: predicated region fallthrough
CT: control target
= control target key end

     0   :  { %14 = vsyncpa [#allocation4], 0  ;;  %s1623_s0 = inlined_call_operand.vmem [shape: bf16[64,4], index: 0, kind: input, shape index: {}]   ;;  %s1624_s1 = inlined_call_operand.hbm [shape: bf16[128,128], index: 1, kind: input, shape index: {}]   ;;  %s1625_s2 = inlined_call_operand.vmem [shape: f32[1,128], index: 2, kind: input, shape index: {}]   ;;  %s1626_s3 = inlined_call_operand.hbm [shape: bf16[128,128], index: 3, kind: input, shape index: {}]   ;;  %s1627_s4 = inlined_call_operand.vmem [shape: f32[1,128], index: 4, kind: input, shape index: {}]   ;;  %s1628_s5 = inlined_call_operand.hbm [shape: bf16[128,128], index: 5, kind: input, shape index: {}]   ;;  %s1629_s6 = inlined_call_operand.vmem [shape: f32[1,128], index: 6, kind: input, shape index: {}]   ;;  %s1630_s7 = inlined_call_operand.hbm [shape: bf16[128,128], index: 7, kind: input, shape index: {}]   ;;  %s1631_s8 = inlined_call_operand.vmem [shape: f32[1,128], index: 8, kind: input, shape index: {}]   ;;  %s1632_s9 = inlined_call_operand.vmem [shape: f32[64,2], index: 9, kind: output, shape index: {}]  }
   0x1   :  { %15 = vsyncpa [#allocation6], 0 }
   0x2   :  { %16 = vsyncpa [#allocation9], 0  ;;  %s1493_s30 = smov 0  }
   0x3 LB: > { %s1025_s10 = sadd.s32 4294967295, %s1434_s30   ;;  %p1027_p0 = scmp.ge.s32.totalorder %s1434_s30, 1  ;;  %s1434_s30 = sphi %s1493_s30, %s22_s30  }
   0x4   : > { %p247_p1 = scmp.lt.s32.totalorder %s1434_s30, 3  ;;  %p1503_p2 = scmp.eq.s32.totalorder %s1025_s10, 0 }
   0x5   : > { %s1436_s13 = smov [#allocation5]   ;;  %s1437_s15 = smov [#allocation3]  }
   0x6   : > { %p1507_p3 = pnand %p1027_p0, %p247_p1  ;;  %s275_s14 = sshll.u32 %s1436_s13, 4  ;;  %s276_s14 = int_to_ptr.vmem [resolvable:$true] %s275_s14 }
   0x7   : > { %s259_s16 = sshll.u32 %s1437_s15, 4  ;;  %s1438_s18 = smov [#allocation7]   ;;  %s1513_s16 = int_to_ptr.vmem [resolvable:$true] %s259_s16 }
   0x8   : > { %p1218_p4 = pneg %p1507_p3  ;;  %s291_s19 = sshll.u32 %s1438_s18, 4  ;;  %s1521_s19 = int_to_ptr.vmem [resolvable:$true] %s291_s19 }
   0x9   : > { %s1439_s20 = smov [#allocation8]   ;;  %s1323_s22 = scalar_lea.vmem %s276_s14, 1024 }
   0xa   : > { %p1517_p5 = pnand %p1503_p2, %p1218_p4  ;;  %s1523_s21 = sshll.u32 %s1439_s20, 4  ;;  %s308_s21 = int_to_ptr.vmem [resolvable:$true] %s1523_s21 }
   0xb   : > { %p1324_p7 = scmp.ne.s32.totalorder %s276_s14, %s1323_s22  ;;  %p1331_p10 = scmp.lt.s32.totalorder %s276_s14, %s276_s14 }
   0xc   : > { %p1314_p6 = pneg %p1517_p5  ;;  %p1332_p11 = scmp.lt.s32.totalorder %s1323_s22, %s1323_s22 }
   0xe   : > { %p1326_p8 = pnand %p1324_p7, %p1314_p6  ;;  %p1333_p12 = por %p1332_p11, %p1331_p10 }
  0x10   : > { %p1327_p9 = pneg %p1326_p8 }
  0x12   : > { %p1334_p13 = pnand %p1333_p12, %p1327_p9 }
  0x14   : > { %1337 = shalt.err (!%p1334_p13)
}
  0x15   : > { %s1440_s23 = smov 64   ;;  %s1441_s24 = smov 4  }
  0x16   : > { %1224 = dma.hbm_to_vmem [thread:$0]  (!%p1517_p5), %s1626_s3, 1024, %s276_s14, [#allocation6], %s1440_s23, %s1440_s23, %s1441_s24  }
  0x17   : > { %s1349_s27 = scalar_lea.vmem %s1513_s16, 1024  ;;  %p1357_p7 = scmp.lt.s32.totalorder %s1513_s16, %s1513_s16 }
  0x18   : > { %p1350_p0 = scmp.ne.s32.totalorder %s1513_s16, %s1349_s27  ;;  %p1358_p8 = scmp.lt.s32.totalorder %s1349_s27, %s1349_s27 }
  0x1a   : > { %p1352_p1 = pnand %p1350_p0, %p1314_p6  ;;  %p1359_p9 = por %p1358_p8, %p1357_p7 }
  0x1c   : > { %p1353_p4 = pneg %p1352_p1 }
  0x1e   : > { %p1360_p10 = pnand %p1359_p9, %p1353_p4 }
  0x20   : > { %1363 = shalt.err (!%p1360_p10)
}
  0x21   : > { %1221 = dma.hbm_to_vmem [thread:$0]  (!%p1517_p5), %s1624_s1, 1024, %s1513_s16, [#allocation4], %s1440_s23, %s1440_s23, %s1441_s24  }
  0x22   : > { %s1375_s13 = scalar_lea.vmem %s1521_s19, 1024  ;;  %p1383_p0 = scmp.lt.s32.totalorder %s1521_s19, %s1521_s19 }
  0x23   : > { %p1376_p11 = scmp.ne.s32.totalorder %s1521_s19, %s1375_s13  ;;  %p1384_p1 = scmp.lt.s32.totalorder %s1375_s13, %s1375_s13 }
  0x25   : > { %p1378_p12 = pnand %p1376_p11, %p1314_p6  ;;  %p1385_p4 = por %p1384_p1, %p1383_p0 }
  0x27   : > { %p1379_p13 = pneg %p1378_p12 }
  0x29   : > { %p1386_p7 = pnand %p1385_p4, %p1379_p13 }
  0x2b   : > { %1389 = shalt.err (!%p1386_p7)
}
  0x2c   : > { %1227 = dma.hbm_to_vmem [thread:$0]  (!%p1517_p5), %s1628_s5, 1024, %s1521_s19, [#allocation6], %s1440_s23, %s1440_s23, %s1441_s24  }
  0x2d   : > { %s1401_s16 = scalar_lea.vmem %s308_s21, 1024  ;;  %p1409_p11 = scmp.lt.s32.totalorder %s308_s21, %s308_s21 }
  0x2e   : > { %p1402_p8 = scmp.ne.s32.totalorder %s308_s21, %s1401_s16  ;;  %p1410_p12 = scmp.lt.s32.totalorder %s1401_s16, %s1401_s16 }
  0x30   : > { %p1404_p9 = pnand %p1402_p8, %p1314_p6  ;;  %p1411_p13 = por %p1410_p12, %p1409_p11 }
  0x32   : > { %p1405_p10 = pneg %p1404_p9 }
  0x34   : > { %p1412_p0 = pnand %p1411_p13, %p1405_p10 }
  0x36   : > { %1415 = shalt.err (!%p1412_p0)
}
  0x37   : > { %1230 = dma.hbm_to_vmem [thread:$0]  (!%p1517_p5), %s1630_s7, 1024, %s308_s21, [#allocation9], %s1440_s23, %s1440_s23, %s1441_s24  }
  0x38   : > { %335 = sbr.rel (%p1507_p3) target bundleno = 955 (0x3bb), region = 56 }
  0x3d   : > { %1421 = dma.done.wait (%p1503_p2), [#allocation4], 1024  }
  0x3e   : > { %1423 = vsyncadd (%p1503_p2), [#allocation4], 4294966272 }
  0x3f   : > { %1425 = dma.done.wait (%p1503_p2), [#allocation6], 2048  }
  0x40   : > { %1427 = vsyncadd (%p1503_p2), [#allocation6], 4294965248 }
  0x41   : > { %1429 = dma.done.wait (%p1503_p2), [#allocation9], 1024  }
  0x42   : > { %1431 = vsyncadd (%p1503_p2), [#allocation9], 4294966272  ;;  %s1038_s12 = sshll.u32 %s1025_s10, 2  ;;  %v1442_v0 = vmov 0   ;;  %v1254_v1 = vld [vmem:[#allocation3 + $0x38] sm:$0xff]   ;;  %v1255_v2 = vld [vmem:[#allocation3 + $0x30] sm:$0xff]  }
  0x43   : > { %p384_p3 = scmp.lt.s32.totalorder %s1038_s12, 7  ;;  %396 = vst [vmem:[#allocation2] sm:$0xf] %v1442_v0  ;;  %397 = vst [vmem:[#allocation2 + $0x4] sm:$0xf] %v1442_v0  ;;  %1122 = vmatprep.subr.bf16.mxu0 %v1254_v1  ;;  %v1256_v3 = vld [vmem:[#allocation3 + $0x28] sm:$0xff]  }
  0x44   : > { %398 = vst [vmem:[#allocation2 + $0x8] sm:$0xf] %v1442_v0  ;;  %399 = vst [vmem:[#allocation2 + $0xc] sm:$0xf] %v1442_v0  ;;  %1123 = vmatpush3.bf16.msra.mxu0 %v1254_v1  ;;  %vm404_vm0 = vcmask 27648   ;;  %v1257_v4 = vld [vmem:[#allocation3 + $0x20] sm:$0xff]  }
  0x45   : > { %s1637_s12 = smov (!%p384_p3, %s1038_s12), 7  ;;  %1124 = vmatprep.subr.bf16.mxu0 %v1255_v2  ;;  %v1258_v9 = vld [vmem:[#allocation3 + $0x18] sm:$0xff]   ;;  %v1265_v11 = vld [vmem:[#allocation5 + $0x30] sm:$0xff]   ;;  %v1260_v14 = vld [vmem:[#allocation3 + $0x8] sm:$0xff]   ;;  %vm923_vm1 = vcmask 15360  }
  0x46   : > { %s1039_s17 = sshll.u32 %s1637_s12, 2  ;;  %v1264_v10 = vld [vmem:[#allocation5 + $0x38] sm:$0xff]   ;;  %v1259_v12 = vld [vmem:[#allocation3 + $0x10] sm:$0xff]   ;;  %v1261_v15 = vld [vmem:[#allocation3] sm:$0xff]   ;;  %s1041_s27 = sshll.u32 %s1637_s12, 3 }
  0x47   : > { %s387_s10 = scalar_lea.vmem %s1623_s0, %s1039_s17  ;;  %1142 = vmatprep.subr.bf16.mxu1 %v1264_v10  ;;  %v1266_v17 = vld [vmem:[#allocation5 + $0x28] sm:$0xff]   ;;  %v1267_v18 = vld [vmem:[#allocation5 + $0x20] sm:$0xff]   ;;  %v1268_v19 = vld [vmem:[#allocation5 + $0x18] sm:$0xff]   ;;  %s393_s15 = scalar_lea.vmem %s1632_s9, %s1041_s27 }
  0x48   : > { %1125 = vmatpush3.bf16.msra.mxu0 %v1255_v2  ;;  %v400_v5 = vld [vmem:[%s387_s10] sm:$0xf]  ;;  %v401_v6 = vld [vmem:[%s387_s10 + $0x4] sm:$0xf]  ;;  %v402_v7 = vld [vmem:[%s387_s10 + $0x8] sm:$0xf]  ;;  %1143 = vmatpush3.bf16.msra.mxu1 %v1264_v10 }
  0x49   : > { %1126 = vmatprep.subr.bf16.mxu0 %v1256_v3  ;;  %405 = vst.msk [vmem:[#allocation2] sm:$0xf] %vm404_vm0, %v400_v5  ;;  %406 = vst.msk [vmem:[#allocation2 + $0x4] sm:$0xf] %vm404_vm0, %v401_v6  ;;  %v403_v8 = vld [vmem:[%s387_s10 + $0xc] sm:$0xf]  ;;  %1144 = vmatprep.subr.bf16.mxu1 %v1265_v11 }
  0x4a   : > { %407 = vst.msk [vmem:[#allocation2 + $0x8] sm:$0xf] %vm404_vm0, %v402_v7  ;;  %408 = vst.msk [vmem:[#allocation2 + $0xc] sm:$0xf] %vm404_vm0, %v403_v8  ;;  %v1269_v20 = vld [vmem:[#allocation5 + $0x10] sm:$0xff]   ;;  %v1270_v21 = vld [vmem:[#allocation5 + $0x8] sm:$0xff]  }
  0x4b   : > { %v1271_v22 = vld [vmem:[#allocation5] sm:$0xff]   ;;  %v1272_v23 = vld [vmem:[#allocation7 + $0x38] sm:$0xff]   ;;  %v1273_v24 = vld [vmem:[#allocation7 + $0x30] sm:$0xff]  }
  0x4c   : > { %1127 = vmatpush3.bf16.msra.mxu0 %v1256_v3  ;;  %1145 = vmatpush3.bf16.msra.mxu1 %v1265_v11  ;;  %v1042_v26 = vld [vmem:[%s1625_s2] ss:$0 sm:$0xff]  ;;  %v1274_v40 = vld [vmem:[#allocation7 + $0x28] sm:$0xff]   ;;  %v1275_v41 = vld [vmem:[#allocation7 + $0x20] sm:$0xff]  }
  0x4d   : > { %1128 = vmatprep.subr.bf16.mxu0 %v1257_v4  ;;  %1146 = vmatprep.subr.bf16.mxu1 %v1266_v17  ;;  %v1276_v42 = vld [vmem:[#allocation7 + $0x18] sm:$0xff]   ;;  %v1277_v43 = vld [vmem:[#allocation7 + $0x10] sm:$0xff]   ;;  %v1278_v44 = vld [vmem:[#allocation7 + $0x8] sm:$0xff]  }
  0x4e   : > { %v1279_v45 = vld [vmem:[#allocation7] sm:$0xff]   ;;  %v1280_v46 = vld [vmem:[#allocation8 + $0x38] sm:$0xff]   ;;  %v1281_v47 = vld [vmem:[#allocation8 + $0x30] sm:$0xff]  }
  0x4f   : > { %v1053_v49 = vld [vmem:[%s1627_s4] ss:$0 sm:$0xff]  ;;  %v1282_v63 = vld [vmem:[#allocation8 + $0x28] sm:$0xff]   ;;  %v1283_v0 = vld [vmem:[#allocation8 + $0x20] sm:$0xff]  }
  0x50   : > { %1129 = vmatpush3.bf16.msra.mxu0 %v1257_v4  ;;  %v1262_v13 = vld [vmem:[#allocation2] sm:$0xff]   ;;  %1147 = vmatpush3.bf16.msra.mxu1 %v1266_v17  ;;  %v1284_v1 = vld [vmem:[#allocation8 + $0x18] sm:$0xff]   ;;  %v1286_v3 = vld [vmem:[#allocation8 + $0x8] sm:$0xff]  }
  0x51   : > { %1130 = vmatprep.subr.bf16.mxu0 %v1258_v9  ;;  %1138 = vmatprep.mubr.bf16.mxu0 %v1262_v13  ;;  %v1263_v16 = vld [vmem:[#allocation2 + $0x8] sm:$0xff]   ;;  %v1285_v2 = vld [vmem:[#allocation8 + $0x10] sm:$0xff]   ;;  %v1287_v4 = vld [vmem:[#allocation8] sm:$0xff]  }
  0x52   : > { %1148 = vmatprep.subr.bf16.mxu1 %v1267_v18  ;;  %v1062_v6 = vld [vmem:[%s1629_s6] ss:$0 sm:$0xff] }
  0x54   : > { %1131 = vmatpush3.bf16.msra.mxu0 %v1258_v9  ;;  %1149 = vmatpush3.bf16.msra.mxu1 %v1267_v18 }
  0x55   : > { %1132 = vmatprep.subr.bf16.mxu0 %v1259_v12  ;;  %1150 = vmatprep.subr.bf16.mxu1 %v1268_v19 }
  0x58   : > { %1133 = vmatpush3.bf16.msra.mxu0 %v1259_v12  ;;  %1151 = vmatpush3.bf16.msra.mxu1 %v1268_v19 }
  0x59   : > { %1134 = vmatprep.subr.bf16.mxu0 %v1260_v14  ;;  %1152 = vmatprep.subr.bf16.mxu1 %v1269_v20 }
  0x5c   : > { %1135 = vmatpush3.bf16.msra.mxu0 %v1260_v14  ;;  %1153 = vmatpush3.bf16.msra.mxu1 %v1269_v20 }
  0x5d   : > { %1136 = vmatprep.subr.bf16.mxu0 %v1261_v15  ;;  %1154 = vmatprep.subr.bf16.mxu1 %v1270_v21 }
  0x60   : > { %1137 = vmatpush3.bf16.msra.mxu0 %v1261_v15  ;;  %1155 = vmatpush3.bf16.msra.mxu1 %v1270_v21  ;;  %v1071_v21 = vld [vmem:[%s1631_s8] ss:$0 sm:$0xff] }
  0x61   : > { %1156 = vmatprep.subr.bf16.mxu1 %v1271_v22  ;;  %1162 = vmatprep.subr.bf16.mxu0 %v1272_v23 }
  0x63   : > { %1139 = vmatmul.mubr.bf16.vlgmr.msra.gmra.mxu0 %v1263_v16 }
  0x64   : > { %1157 = vmatpush3.bf16.msra.mxu1 %v1271_v22  ;;  %1163 = vmatpush3.bf16.msra.mxu0 %v1272_v23 }
  0x65   : > { %1164 = vmatprep.subr.bf16.mxu0 %v1273_v24  ;;  %1182 = vmatprep.subr.bf16.mxu1 %v1280_v46 }
  0x68   : > { %1165 = vmatpush3.bf16.msra.mxu0 %v1273_v24 }
  0x69   : > { %1166 = vmatprep.subr.bf16.mxu0 %v1274_v40 }
  0x6c   : > { %1167 = vmatpush3.bf16.msra.mxu0 %v1274_v40 }
  0x6d   : > { %1168 = vmatprep.subr.bf16.mxu0 %v1275_v41 }
  0x70   : > { %1169 = vmatpush3.bf16.msra.mxu0 %v1275_v41 }
  0x71   : > { %1170 = vmatprep.subr.bf16.mxu0 %v1276_v42 }
  0x74   : > { %1171 = vmatpush3.bf16.msra.mxu0 %v1276_v42 }
  0x75   : > { %1172 = vmatprep.subr.bf16.mxu0 %v1277_v43 }
  0x78   : > { %1173 = vmatpush3.bf16.msra.mxu0 %v1277_v43 }
  0x79   : > { %1174 = vmatprep.subr.bf16.mxu0 %v1278_v44 }
  0x7c   : > { %1175 = vmatpush3.bf16.msra.mxu0 %v1278_v44 }
  0x7d   : > { %1176 = vmatprep.subr.bf16.mxu0 %v1279_v45 }
  0x80   : > { %1177 = vmatpush3.bf16.msra.mxu0 %v1279_v45 }
 0x123   : > { %v1140_v25 = vpop.f32.mrf.mxu0 }
 0x124   : > { %v539_v31 = vadd.f32 %v1140_v25, %v1042_v26 }
 0x125   : > { %v530_v27 = vpop.f32.mrf.mxu0 }
 0x126   : > { %v531_v28 = vadd.f32 %v1042_v26, %v530_v27 }
 0x127   : > { %v1141_v29 = vpop.f32.mrf.mxu0 }
 0x128   : > { %v542_v30 = vadd.f32 %v1141_v29, %v1042_v26  ;;  %1288 = vtanh.f32 %v531_v28 }
 0x129   : > { %v533_v32 = vpop.f32.mrf.mxu0 }
 0x12a   : > { %v534_v33 = vadd.f32 %v1042_v26, %v533_v32  ;;  %1290 = vtanh.f32 %v542_v30 }
 0x12c   : > { %1292 = vtanh.f32 %v534_v33 }
 0x12d   : > { %1294 = vtanh.f32 %v539_v31 }
 0x135   : > { %v1289_v34 = vpop.eup %1288 }
 0x137   : > { %v1291_v35 = vpop.eup %1290 }
 0x139   : > { %v1293_v36 = vpop.eup %1292 }
 0x13a   : > { %v1295_v37 = vpop.eup %1294  ;;  %v549_v38 = vpack.c.bf16 %v1293_v36, %v1289_v34 }
 0x13b   : > { %v550_v39 = vpack.c.bf16 %v1291_v35, %v1295_v37 }
 0x13c   : > { %1158 = vmatprep.mubr.bf16.mxu1 %v549_v38 }
 0x13d   : > { %1159 = vmatmul.mubr.bf16.vlgmr.msra.gmra.mxu1 %v550_v39 }
 0x13e   : > { %1183 = vmatpush3.bf16.msra.mxu1 %v1280_v46 }
 0x13f   : > { %1184 = vmatprep.subr.bf16.mxu1 %v1281_v47 }
 0x142   : > { %1185 = vmatpush3.bf16.msra.mxu1 %v1281_v47 }
 0x143   : > { %1186 = vmatprep.subr.bf16.mxu1 %v1282_v63 }
 0x146   : > { %1187 = vmatpush3.bf16.msra.mxu1 %v1282_v63 }
 0x147   : > { %1188 = vmatprep.subr.bf16.mxu1 %v1283_v0 }
 0x14a   : > { %1189 = vmatpush3.bf16.msra.mxu1 %v1283_v0 }
 0x14b   : > { %1190 = vmatprep.subr.bf16.mxu1 %v1284_v1 }
 0x14e   : > { %1191 = vmatpush3.bf16.msra.mxu1 %v1284_v1 }
 0x14f   : > { %1192 = vmatprep.subr.bf16.mxu1 %v1285_v2 }
 0x152   : > { %1193 = vmatpush3.bf16.msra.mxu1 %v1285_v2 }
 0x153   : > { %1194 = vmatprep.subr.bf16.mxu1 %v1286_v3 }
 0x156   : > { %1195 = vmatpush3.bf16.msra.mxu1 %v1286_v3 }
 0x157   : > { %1196 = vmatprep.subr.bf16.mxu1 %v1287_v4 }
 0x15a   : > { %1197 = vmatpush3.bf16.msra.mxu1 %v1287_v4 }
 0x1fd   : > { %v1160_v48 = vpop.f32.mrf.mxu1 }
 0x1fe   : > { %v665_v54 = vadd.f32 %v1160_v48, %v1053_v49 }
 0x1ff   : > { %v656_v50 = vpop.f32.mrf.mxu1 }
 0x200   : > { %v657_v51 = vadd.f32 %v1053_v49, %v656_v50 }
 0x201   : > { %v1161_v52 = vpop.f32.mrf.mxu1 }
 0x202   : > { %v668_v53 = vadd.f32 %v1161_v52, %v1053_v49  ;;  %1296 = vtanh.f32 %v657_v51 }
 0x203   : > { %v659_v55 = vpop.f32.mrf.mxu1 }
 0x204   : > { %v660_v56 = vadd.f32 %v1053_v49, %v659_v55  ;;  %1298 = vtanh.f32 %v668_v53 }
 0x206   : > { %1300 = vtanh.f32 %v660_v56 }
 0x207   : > { %1302 = vtanh.f32 %v665_v54 }
 0x20f   : > { %v1297_v57 = vpop.eup %1296 }
 0x211   : > { %v1299_v58 = vpop.eup %1298 }
 0x213   : > { %v1301_v59 = vpop.eup %1300 }
 0x214   : > { %v1303_v60 = vpop.eup %1302  ;;  %v675_v61 = vpack.c.bf16 %v1301_v59, %v1297_v57 }
 0x215   : > { %v676_v62 = vpack.c.bf16 %v1299_v58, %v1303_v60 }
 0x216   : > { %1178 = vmatprep.mubr.bf16.mxu0 %v675_v61 }
 0x217   : > { %1179 = vmatmul.mubr.bf16.vlgmr.msra.gmra.mxu0 %v676_v62 }
 0x2d7   : > { %v1180_v5 = vpop.f32.mrf.mxu0 }
 0x2d8   : > { %v791_v11 = vadd.f32 %v1180_v5, %v1062_v6 }
 0x2d9   : > { %v782_v7 = vpop.f32.mrf.mxu0 }
 0x2da   : > { %v783_v8 = vadd.f32 %v1062_v6, %v782_v7 }
 0x2db   : > { %v1181_v9 = vpop.f32.mrf.mxu0 }
 0x2dc   : > { %v794_v10 = vadd.f32 %v1181_v9, %v1062_v6  ;;  %1304 = vtanh.f32 %v783_v8 }
 0x2dd   : > { %v785_v12 = vpop.f32.mrf.mxu0 }
 0x2de   : > { %v786_v13 = vadd.f32 %v1062_v6, %v785_v12  ;;  %1306 = vtanh.f32 %v794_v10 }
 0x2e0   : > { %1308 = vtanh.f32 %v786_v13 }
 0x2e1   : > { %1310 = vtanh.f32 %v791_v11 }
 0x2e9   : > { %v1305_v14 = vpop.eup %1304 }
 0x2eb   : > { %v1307_v15 = vpop.eup %1306 }
 0x2ed   : > { %v1309_v16 = vpop.eup %1308 }
 0x2ee   : > { %v1311_v17 = vpop.eup %1310  ;;  %v801_v18 = vpack.c.bf16 %v1309_v16, %v1305_v14 }
 0x2ef   : > { %v802_v19 = vpack.c.bf16 %v1307_v15, %v1311_v17 }
 0x2f0   : > { %1198 = vmatprep.mubr.bf16.mxu1 %v801_v18 }
 0x2f1   : > { %1199 = vmatmul.mubr.bf16.vlgmr.msra.gmra.mxu1 %v802_v19 }
 0x3b1   : > { %v1200_v20 = vpop.f32.mrf.mxu1 }
 0x3b2   : > { %v917_v27 = vadd.f32 %v1200_v20, %v1071_v21 }
 0x3b3   : > { %v908_v22 = vpop.f32.mrf.mxu1 }
 0x3b4   : > { %v909_v23 = vadd.f32 %v1071_v21, %v908_v22  ;;  %926 = vst.msk [vmem:[%s393_s15 + $0x10] sm:$0xff] %vm923_vm1, %v917_v27 }
 0x3b5   : > { %v1201_v24 = vpop.f32.mrf.mxu1 }
 0x3b6   : > { %924 = vst.msk [vmem:[%s393_s15] sm:$0xff] %vm923_vm1, %v909_v23  ;;  %v920_v28 = vadd.f32 %v1201_v24, %v1071_v21 }
 0x3b7   : > { %v911_v25 = vpop.f32.mrf.mxu1 }
 0x3b8   : > { %v912_v26 = vadd.f32 %v1071_v21, %v911_v25  ;;  %927 = vst.msk [vmem:[%s393_s15 + $0x18] sm:$0xff] %vm923_vm1, %v920_v28 }
 0x3ba   : > { %925 = vst.msk [vmem:[%s393_s15 + $0x8] sm:$0xff] %vm923_vm1, %v912_v26 }
 0x3bb PF: > { %s22_s30 = sadd.s32 1, %s1434_s30  }
 0x3bc   : > { %p19_p2 = scmp.ge.s32.totalorder %s22_s30, 4  }
 0x3be   :  { %21 = sbr.rel (!%p19_p2) target bundleno = 3 (0x3), region = 103 }
 0x3c3   :  { %950 = vsyncpa [#allocation4], 1 }
 0x3c4   :  { %952 = vsyncpa [#allocation4 + $0x1], 1 }
 0x3c5   :  { %953 = vsyncpa [#allocation6], 1 }
 0x3c6   :  { %954 = vsyncpa [#allocation9], 1 }

</bundles_post_ra>
